<compile_context>
chip_gen: v6e
topology: v6e:2x2x1
jax: 0.10.0
libtpu: 0.0.40
codegen_flags: <defaults>
</compile_context>

<pallas_src>
import jax
import jax.numpy as jnp
from jax import lax
from jax.experimental import pallas as pl
from jax.experimental.pallas import tpu as pltpu


def _round_up(n, m):
    return ((n + m - 1) // m) * m


def _mlp_kernel(x_ref, w1_ref, p_ref, o_ref):
    # fc1 on the MXU, contracting the shared 20-dim so the result is batch-on-lanes:
    # (50, 20) bf16  x  (TM, 20) bf16  (rhs transposed)  ->  (50, TM) f32.
    xb = x_ref[...].astype(jnp.bfloat16)          # in-kernel cast (VPU), no wrapper pre-pass
    h = lax.dot_general(
        w1_ref[...], xb,
        dimension_numbers=(((1,), (1,)), ((), ())),
        preferred_element_type=jnp.float32)       # (50, TM)

    p = p_ref[...]                                # (50, 3) packed [b1 | w2 | b2]
    b1 = p[:, 0:1]                                # (50, 1)
    w2 = p[:, 1:2]                                # (50, 1)
    b2 = p[0:1, 2:3]                              # (1, 1)

    h = jnp.maximum(h + b1, 0.0)                  # bias + ReLU in f32 (VPU)
    # fc2 (N=1): VPU multiply + sublane (XLU) reduction instead of a padded MXU pass.
    y = jnp.sum(h * w2, axis=0, keepdims=True) + b2          # (1, TM)
    # sigmoid via tanh (EUP slot, saturates cleanly for large |y|).
    o_ref[...] = 0.5 * (jnp.tanh(0.5 * y) + 1.0)              # (1, TM) lane-dense store


def prepare_params(w1, b1, w2, b2):
    """One-time re-layout of PyTorch-layout params into kernel layout.

    Done OUTSIDE the forward path so no convert/reshape ops are dispatched per call.
    Returns (w1_k, p_k): w1_k is (50,20) bf16; p_k is (50,3) f32 with columns
    [b1, w2, b2-broadcast].
    """
    d_h = w1.shape[0]
    w1_k = w1.astype(jnp.bfloat16)                                     # MXU operand
    p_k = jnp.stack(
        [b1.astype(jnp.float32),
         w2.reshape(d_h).astype(jnp.float32),
         jnp.broadcast_to(b2.astype(jnp.float32).reshape(()), (d_h,))],
        axis=1)                                                        # (50, 3)
    return w1_k, p_k


def simple_net_forward(x, w1_k, p_k, *, tm=None):
    """x: (B, 20) f32; (w1_k, p_k) from prepare_params. Returns (B, 1) f32.

    tm=None -> single grid step over the whole batch (best on v5e/v6e / small B).
    For v7x megacore pass tm = a multiple of 128 giving >=2 tiles (e.g. 512 at B=1000).
    """
    B, d_in = x.shape
    d_h = w1_k.shape[0]

    if tm is None:
        tm = _round_up(B, 8)              # one tile covering the (padded) batch
    n_tiles = pl.cdiv(B, tm)
    b_pad = n_tiles * tm
    if b_pad != B:
        # Zero-filled pad rows flow through bias/ReLU/tanh to finite values and are
        # sliced off below.
        x = jnp.pad(x, ((0, b_pad - B), (0, 0)))

    out = pl.pallas_call(
        _mlp_kernel,
        out_shape=jax.ShapeDtypeStruct((1, b_pad), jnp.float32),
        grid=(n_tiles,),
        in_specs=[
            pl.BlockSpec((tm, d_in), lambda i: (i, 0)),    # x: natural layout, batch tiled
            pl.BlockSpec((d_h, d_in), lambda i: (0, 0)),   # w1: DMA'd once, VMEM-resident
            pl.BlockSpec((d_h, 3), lambda i: (0, 0)),      # packed [b1|w2|b2]: resident
        ],
        out_specs=pl.BlockSpec((1, tm), lambda i: (0, i)),  # lane-dense unmasked stores
        compiler_params=pltpu.CompilerParams(dimension_semantics=("parallel",)),
    )(x, w1_k, p_k)

    # (1, b_pad) lane-major row -> (B, 1) column, dropping pad lanes.
    return out[0, :B].reshape(B, 1)


def init_params(key):
    # PyTorch-default-style init: U(-1/sqrt(fan_in), 1/sqrt(fan_in)), PyTorch layouts.
    k1, k2, k3, k4 = jax.random.split(key, 4)
    bound1 = 1.0 / jnp.sqrt(20.0)
    bound2 = 1.0 / jnp.sqrt(50.0)
    w1 = jax.random.uniform(k1, (50, 20), jnp.float32, -bound1, bound1)  # (out, in)
    b1 = jax.random.uniform(k2, (50,), jnp.float32, -bound1, bound1)
    w2 = jax.random.uniform(k3, (1, 50), jnp.float32, -bound2, bound2)   # (out, in)
    b2 = jax.random.uniform(k4, (1,), jnp.float32, -bound2, bound2)
    return w1, b1, w2, b2


if __name__ == "__main__":
    key = jax.random.PRNGKey(0)
    k_x, k_p = jax.random.split(key)
    B = 1000                                  # matches the module's np.random.rand(1000, 20)
    x = jax.random.uniform(k_x, (B, 20), jnp.float32)
    w1, b1, w2, b2 = init_params(k_p)

    # One-time parameter re-layout (outside the forward path).
    w1_k, p_k = prepare_params(w1, b1, w2, b2)

    # Default path: single grid step, no pad (1000 is a multiple of 8).
    out = jax.block_until_ready(simple_net_forward(x, w1_k, p_k))

    # Pure-JAX reference with the same bf16 cast of the fc1 operands.
    xb = x.astype(jnp.bfloat16).astype(jnp.float32)
    w1b = w1.astype(jnp.bfloat16).astype(jnp.float32)
    ref = jax.nn.sigmoid(jnp.maximum(xb @ w1b.T + b1, 0.0) @ w2.T + b2)

    assert out.shape == (B, 1)
    assert jnp.allclose(out, ref, atol=1e-4, rtol=1e-4)

    # Also exercise the multi-tile / padded path (what you'd use on v7x megacore).
    out2 = jax.block_until_ready(simple_net_forward(x, w1_k, p_k, tm=512))
    assert out2.shape == (B, 1)
    assert jnp.allclose(out2, ref, atol=1e-4, rtol=1e-4)

    print("KERNEL_OK")
</pallas_src>

<mosaic_0001>
module attributes {stable_mosaic.version = 11 : i64} {
  func.func @_mlp_kernel(%arg0: i32, %arg1: memref<1000x20xf32, #tpu.memory_space<vmem>>, %arg2: memref<50x20xbf16, #tpu.memory_space<vmem>>, %arg3: memref<50x3xf32, #tpu.memory_space<vmem>>, %arg4: memref<1x1000xf32, #tpu.memory_space<vmem>>) attributes {dimension_semantics = [#tpu.dimension_semantics<parallel>], iteration_bounds = array<i64: 1>, scalar_prefetch = 0 : i64, scratch_operands = 0 : i64, tpu.core_type = #tpu.core_type<tc>, window_params = [{transform_indices = @transform_0, window_bounds = array<i64: 1000, 20>}, {pipeline_mode = #tpu.pipeline_mode<synchronous>, transform_indices = @transform_1, window_bounds = array<i64: 50, 20>}, {pipeline_mode = #tpu.pipeline_mode<synchronous>, transform_indices = @transform_2, window_bounds = array<i64: 50, 3>}, {transform_indices = @transform_3, window_bounds = array<i64: 1, 1000>}]} {
    %c0 = arith.constant 0 : index
    %c0_0 = arith.constant 0 : index
    %0 = vector.load %arg1[%c0, %c0_0] : memref<1000x20xf32, #tpu.memory_space<vmem>>, vector<1000x20xf32>
    %1 = arith.truncf %0 : vector<1000x20xf32> to vector<1000x20xbf16>
    %c0_1 = arith.constant 0 : index
    %c0_2 = arith.constant 0 : index
    %2 = vector.load %arg2[%c0_1, %c0_2] : memref<50x20xbf16, #tpu.memory_space<vmem>>, vector<50x20xbf16>
    %cst = arith.constant dense<0.000000e+00> : vector<50x1000xf32>
    %3 = tpu.matmul %2, %1, %cst {dimension_numbers = #tpu.dot_dimension_numbers<[1], [1], [0], [0], [0, 0, 1, 0], [], []>} : vector<50x20xbf16>, vector<1000x20xbf16>, vector<50x1000xf32> -> vector<50x1000xf32>
    %c0_3 = arith.constant 0 : index
    %c0_4 = arith.constant 0 : index
    %4 = vector.load %arg3[%c0_3, %c0_4] : memref<50x3xf32, #tpu.memory_space<vmem>>, vector<50x3xf32>
    %5 = vector.extract_strided_slice %4 {offsets = [0, 0], sizes = [50, 1], strides = [1, 1]} : vector<50x3xf32> to vector<50x1xf32>
    %6 = vector.extract_strided_slice %4 {offsets = [0, 1], sizes = [50, 1], strides = [1, 1]} : vector<50x3xf32> to vector<50x1xf32>
    %7 = vector.extract_strided_slice %4 {offsets = [0, 2], sizes = [1, 1], strides = [1, 1]} : vector<50x3xf32> to vector<1x1xf32>
    %8 = vector.broadcast %5 : vector<50x1xf32> to vector<50x1000xf32>
    %9 = arith.addf %3, %8 : vector<50x1000xf32>
    %cst_5 = arith.constant 0.000000e+00 : f32
    %10 = vector.broadcast %cst_5 : f32 to vector<50x1000xf32>
    %11 = arith.maximumf %9, %10 : vector<50x1000xf32>
    %12 = vector.broadcast %6 : vector<50x1xf32> to vector<50x1000xf32>
    %13 = arith.mulf %11, %12 : vector<50x1000xf32>
    %cst_6 = arith.constant dense<0.000000e+00> : vector<1000xf32>
    %14 = vector.multi_reduction <add>, %13, %cst_6 [0] : vector<50x1000xf32> to vector<1000xf32>
    %15 = vector.shape_cast %14 : vector<1000xf32> to vector<1x1000xf32>
    %16 = vector.broadcast %7 : vector<1x1xf32> to vector<1x1000xf32>
    %17 = arith.addf %15, %16 : vector<1x1000xf32>
    %cst_7 = arith.constant 5.000000e-01 : f32
    %18 = vector.broadcast %cst_7 : f32 to vector<1x1000xf32>
    %19 = arith.mulf %18, %17 : vector<1x1000xf32>
    %20 = math.tanh %19 : vector<1x1000xf32>
    %cst_8 = arith.constant 1.000000e+00 : f32
    %21 = vector.broadcast %cst_8 : f32 to vector<1x1000xf32>
    %22 = arith.addf %20, %21 : vector<1x1000xf32>
    %cst_9 = arith.constant 5.000000e-01 : f32
    %23 = vector.broadcast %cst_9 : f32 to vector<1x1000xf32>
    %24 = arith.mulf %23, %22 : vector<1x1000xf32>
    %c0_10 = arith.constant 0 : index
    %c0_11 = arith.constant 0 : index
    %25 = vector.load %arg4[%c0_10, %c0_11] : memref<1x1000xf32, #tpu.memory_space<vmem>>, vector<1x1000xf32>
    tpu.vector_store %arg4[%c0_10, %c0_11], %24 {strides = array<i32>} : memref<1x1000xf32, #tpu.memory_space<vmem>>, vector<1x1000xf32>,
    return
  }
  func.func @transform_0(%arg0: i32) -> (i32, i32) {
    %c0_i32 = arith.constant 0 : i32
    %c0_i32_0 = arith.constant 0 : i32
    return %arg0, %c0_i32 : i32, i32
  }
  func.func @transform_1(%arg0: i32) -> (i32, i32) {
    %c0_i32 = arith.constant 0 : i32
    %c0_i32_0 = arith.constant 0 : i32
    %c0_i32_1 = arith.constant 0 : i32
    return %c0_i32, %c0_i32_0 : i32, i32
  }
  func.func @transform_2(%arg0: i32) -> (i32, i32) {
    %c0_i32 = arith.constant 0 : i32
    %c0_i32_0 = arith.constant 0 : i32
    %c0_i32_1 = arith.constant 0 : i32
    return %c0_i32, %c0_i32_0 : i32, i32
  }
  func.func @transform_3(%arg0: i32) -> (i32, i32) {
    %c0_i32 = arith.constant 0 : i32
    %c0_i32_0 = arith.constant 0 : i32
    return %c0_i32, %arg0 : i32, i32
  }
}

</mosaic_0001>

<bundles_post_ra>
// kernel: tpu_custom_call.1
= control target key start
LH: loop header
LB: loop body
LE: loop exit
PB: predicated region body
PF: predicated region fallthrough
CT: control target
= control target key end

     0   :  { %vm271_vm0 = vcmask 162816   ;;  %v1302_v7 = vmov 0   ;;  %s2083_s0 = inlined_call_operand.vmem [shape: f32[1000,20], index: 0, kind: input, shape index: {}]   ;;  %s2084_s1 = inlined_call_operand.vmem [shape: bf16[50,20], index: 1, kind: input, shape index: {}]   ;;  %s2085_s2 = inlined_call_operand.vmem [shape: f32[50,3], index: 2, kind: input, shape index: {}]   ;;  %s2086_s3 = inlined_call_operand.hbm [shape: f32[1,1000], index: 3, kind: output, shape index: {}]  }
   0x1   :  { %v46_v0 = vld [vmem:[%s2083_s0 + $0xf0] sm:$0xff]  ;;  %v47_v1 = vld [vmem:[%s2083_s0 + $0xf8] sm:$0xff]  ;;  %1252 = vset.pattern.permute.xlu0 %v1302_v7  ;;  %1253 = vset.pattern.permute.xlu1 %v1302_v7  ;;  %v44_v12 = vld [vmem:[%s2083_s0 + $0xe0] sm:$0xff] }
   0x2   :  { %v78_v2 = vld [vmem:[%s2083_s0 + $0x1f0] sm:$0xff]  ;;  %v156_v3 = vpack.c.bf16 %v47_v1, %v46_v0  ;;  %v79_v4 = vld [vmem:[%s2083_s0 + $0x1f8] sm:$0xff]  ;;  %v45_v14 = vld [vmem:[%s2083_s0 + $0xe8] sm:$0xff] }
   0x3   :  { %v30_v5 = vld [vmem:[%s2083_s0 + $0x70] sm:$0xff]  ;;  %v31_v6 = vld [vmem:[%s2083_s0 + $0x78] sm:$0xff]  ;;  %v172_v8 = vpack.c.bf16 %v79_v4, %v78_v2  ;;  %v76_v15 = vld [vmem:[%s2083_s0 + $0x1e0] sm:$0xff]  ;;  %v155_v18 = vpack.c.bf16 %v45_v14, %v44_v12 }
   0x4   :  { %v148_v9 = vpack.c.bf16 %v31_v6, %v30_v5  ;;  %v62_v10 = vld [vmem:[%s2083_s0 + $0x170] sm:$0xff]  ;;  %v63_v11 = vld [vmem:[%s2083_s0 + $0x178] sm:$0xff]  ;;  %1223 = vmatprep.subr.msk.bf16.mxu0 %vm271_vm0, %v156_v3  ;;  %v77_v16 = vld [vmem:[%s2083_s0 + $0x1e8] sm:$0xff] }
   0x5   :  { %v164_v13 = vpack.c.bf16 %v63_v11, %v62_v10  ;;  %1231 = vmatprep.subr.msk.bf16.mxu1 %vm271_vm0, %v172_v8  ;;  %v171_v19 = vpack.c.bf16 %v77_v16, %v76_v15  ;;  %v28_v20 = vld [vmem:[%s2083_s0 + $0x60] sm:$0xff]  ;;  %v29_v21 = vld [vmem:[%s2083_s0 + $0x68] sm:$0xff]  ;;  %v42_v27 = vld [vmem:[%s2083_s0 + $0xd0] sm:$0xff] }
   0x6   :  { %v306_v17 = vsel %vm271_vm0, %v148_v9, 0  ;;  %v60_v22 = vld [vmem:[%s2083_s0 + $0x160] sm:$0xff]  ;;  %v61_v24 = vld [vmem:[%s2083_s0 + $0x168] sm:$0xff]  ;;  %v147_v25 = vpack.c.bf16 %v29_v21, %v28_v20  ;;  %v43_v28 = vld [vmem:[%s2083_s0 + $0xd8] sm:$0xff] }
   0x7   :  { %1152 = vmatpush3.bf16.xpose.msra.mxu0 %v306_v17  ;;  %v354_v23 = vsel %vm271_vm0, %v164_v13, 0  ;;  %v163_v26 = vpack.c.bf16 %v61_v24, %v60_v22  ;;  %v74_v29 = vld [vmem:[%s2083_s0 + $0x1d0] sm:$0xff]  ;;  %v75_v30 = vld [vmem:[%s2083_s0 + $0x1d8] sm:$0xff]  ;;  %v154_v32 = vpack.c.bf16 %v43_v28, %v42_v27  ;;  %v40_v41 = vld [vmem:[%s2083_s0 + $0xc0] sm:$0xff] }
   0x8   :  { %1176 = vmatpush3.bf16.xpose.msra.mxu1 %v354_v23  ;;  %1224 = vmatprep.subr.msk.bf16.mxu0 %vm271_vm0, %v155_v18  ;;  %v303_v31 = vsel %vm271_vm0, %v147_v25, 0  ;;  %v170_v34 = vpack.c.bf16 %v75_v30, %v74_v29  ;;  %v26_v35 = vld [vmem:[%s2083_s0 + $0x50] sm:$0xff]  ;;  %v27_v36 = vld [vmem:[%s2083_s0 + $0x58] sm:$0xff]  ;;  %v41_v42 = vld [vmem:[%s2083_s0 + $0xc8] sm:$0xff] }
   0x9   :  { %1232 = vmatprep.subr.msk.bf16.mxu1 %vm271_vm0, %v171_v19  ;;  %v351_v33 = vsel %vm271_vm0, %v163_v26, 0  ;;  %v58_v37 = vld [vmem:[%s2083_s0 + $0x150] sm:$0xff]  ;;  %v59_v38 = vld [vmem:[%s2083_s0 + $0x158] sm:$0xff]  ;;  %v146_v39 = vpack.c.bf16 %v27_v36, %v26_v35  ;;  %v72_v43 = vld [vmem:[%s2083_s0 + $0x1c0] sm:$0xff]  ;;  %v153_v46 = vpack.c.bf16 %v41_v42, %v40_v41  ;;  %v1303_v41 = vmov 1  }
   0xa   :  { %v162_v40 = vpack.c.bf16 %v59_v38, %v58_v37  ;;  %v73_v44 = vld [vmem:[%s2083_s0 + $0x1c8] sm:$0xff]  ;;  %v24_v49 = vld [vmem:[%s2083_s0 + $0x40] sm:$0xff]  ;;  %v38_v54 = vld [vmem:[%s2083_s0 + $0xb0] sm:$0xff] }
   0xb   :  { %v300_v45 = vsel %vm271_vm0, %v146_v39, 0  ;;  %v169_v48 = vpack.c.bf16 %v73_v44, %v72_v43  ;;  %v25_v50 = vld [vmem:[%s2083_s0 + $0x48] sm:$0xff]  ;;  %v56_v51 = vld [vmem:[%s2083_s0 + $0x140] sm:$0xff]  ;;  %v39_v57 = vld [vmem:[%s2083_s0 + $0xb8] sm:$0xff] }
   0xc   :  { %v348_v47 = vsel %vm271_vm0, %v162_v40, 0  ;;  %v57_v52 = vld [vmem:[%s2083_s0 + $0x148] sm:$0xff]  ;;  %v145_v53 = vpack.c.bf16 %v25_v50, %v24_v49  ;;  %v1444_v55 = vld [vmem:[%s2084_s1] sm:$0xff]   ;;  %v70_v58 = vld [vmem:[%s2083_s0 + $0x1b0] sm:$0xff]  ;;  %v152_v61 = vpack.c.bf16 %v39_v57, %v38_v54 }
   0xd   :  { %v161_v56 = vpack.c.bf16 %v57_v52, %v56_v51  ;;  %v71_v59 = vld [vmem:[%s2083_s0 + $0x1b8] sm:$0xff]  ;;  %1167 = vmatprep.mubr.msk.bf16.mxu0 %vm271_vm0, %v1444_v55  ;;  %1191 = vmatprep.mubr.msk.bf16.mxu1 %vm271_vm0, %v1444_v55  ;;  %v22_v0 = vld [vmem:[%s2083_s0 + $0x30] sm:$0xff]  ;;  %v36_v6 = vld [vmem:[%s2083_s0 + $0xa0] sm:$0xff] }
   0xe   :  { %v297_v60 = vsel %vm271_vm0, %v145_v53, 0  ;;  %v168_v63 = vpack.c.bf16 %v71_v59, %v70_v58  ;;  %v23_v1 = vld [vmem:[%s2083_s0 + $0x38] sm:$0xff]  ;;  %v54_v2 = vld [vmem:[%s2083_s0 + $0x130] sm:$0xff]  ;;  %v37_v8 = vld [vmem:[%s2083_s0 + $0xa8] sm:$0xff] }
   0xf   :  { %1154 = vmatpush3.bf16.xpose.msra.mxu0 %v303_v31  ;;  %v345_v62 = vsel %vm271_vm0, %v161_v56, 0  ;;  %v55_v3 = vld [vmem:[%s2083_s0 + $0x138] sm:$0xff]  ;;  %v144_v4 = vpack.c.bf16 %v23_v1, %v22_v0  ;;  %v68_v9 = vld [vmem:[%s2083_s0 + $0x1a0] sm:$0xff]  ;;  %v69_v10 = vld [vmem:[%s2083_s0 + $0x1a8] sm:$0xff]  ;;  %v151_v12 = vpack.c.bf16 %v37_v8, %v36_v6 }
  0x10   :  { %1178 = vmatpush3.bf16.xpose.msra.mxu1 %v351_v33  ;;  %1225 = vmatprep.subr.msk.bf16.mxu0 %vm271_vm0, %v154_v32  ;;  %v160_v5 = vpack.c.bf16 %v55_v3, %v54_v2  ;;  %v167_v14 = vpack.c.bf16 %v69_v10, %v68_v9  ;;  %v20_v15 = vld [vmem:[%s2083_s0 + $0x20] sm:$0xff]  ;;  %v21_v16 = vld [vmem:[%s2083_s0 + $0x28] sm:$0xff]  ;;  %v213_v20 = vld [vmem:[%s2085_s2 + $0x10] sm:$0xff] }
  0x11   :  { %1233 = vmatprep.subr.msk.bf16.mxu1 %vm271_vm0, %v170_v34  ;;  %v294_v11 = vsel %vm271_vm0, %v144_v4, 0  ;;  %v52_v17 = vld [vmem:[%s2083_s0 + $0x120] sm:$0xff]  ;;  %v53_v18 = vld [vmem:[%s2083_s0 + $0x128] sm:$0xff]  ;;  %v143_v21 = vpack.c.bf16 %v21_v16, %v20_v15  ;;  %v34_v23 = vld [vmem:[%s2083_s0 + $0x90] sm:$0xff]  ;;  %230 = vperm.xlu1 %1253, %v213_v20  }
  0x12   :  { %v342_v13 = vsel %vm271_vm0, %v160_v5, 0  ;;  %v1505_v19 = vld [vmem:[%s2085_s2] sm:$0xff]  ;;  %v159_v22 = vpack.c.bf16 %v53_v18, %v52_v17  ;;  %v35_v24 = vld [vmem:[%s2083_s0 + $0x98] sm:$0xff]  ;;  %v66_v25 = vld [vmem:[%s2083_s0 + $0x190] sm:$0xff] }
  0x13   :  { %220 = vperm.xlu0 %1252, %v1505_v19   ;;  %v67_v26 = vld [vmem:[%s2083_s0 + $0x198] sm:$0xff]  ;;  %v212_v27 = vld [vmem:[%s2085_s2 + $0x8] sm:$0xff]  ;;  %v291_v29 = vsel %vm271_vm0, %v143_v21, 0  ;;  %v150_v30 = vpack.c.bf16 %v35_v24, %v34_v23  ;;  %v18_v33 = vld [vmem:[%s2083_s0 + $0x10] sm:$0xff] }
  0x14   :  { %v214_v28 = vld [vmem:[%s2085_s2 + $0x18] sm:$0xff]  ;;  %v339_v31 = vsel %vm271_vm0, %v159_v22, 0  ;;  %v166_v32 = vpack.c.bf16 %v67_v26, %v66_v25  ;;  %v50_v35 = vld [vmem:[%s2083_s0 + $0x110] sm:$0xff]  ;;  %v32_v39 = vld [vmem:[%s2083_s0 + $0x80] sm:$0xff] }
  0x15   :  { %v19_v34 = vld [vmem:[%s2083_s0 + $0x18] sm:$0xff]  ;;  %235 = vperm.xlu1 %1253, %v214_v28   ;;  %v33_v40 = vld [vmem:[%s2083_s0 + $0x88] sm:$0xff] }
  0x16   :  { %v51_v36 = vld [vmem:[%s2083_s0 + $0x118] sm:$0xff]  ;;  %v142_v37 = vpack.c.bf16 %v19_v34, %v18_v33 }
  0x17   :  { %1156 = vmatpush3.bf16.xpose.msra.mxu0 %v300_v45  ;;  %225 = vperm.xlu0 %1252, %v212_v27   ;;  %v158_v38 = vpack.c.bf16 %v51_v36, %v50_v35 }
  0x18   :  { %1180 = vmatpush3.bf16.xpose.msra.mxu1 %v348_v47  ;;  %1226 = vmatprep.subr.msk.bf16.mxu0 %vm271_vm0, %v153_v46 }
  0x19   :  { %1234 = vmatprep.subr.msk.bf16.mxu1 %vm271_vm0, %v169_v48 }
  0x1b   :  { %1254 = vset.pattern.permute.xlu0 %v1303_v41 }
  0x1f   :  { %1158 = vmatpush3.bf16.xpose.msra.mxu0 %v297_v60 }
  0x20   :  { %1182 = vmatpush3.bf16.xpose.msra.mxu1 %v345_v62  ;;  %1227 = vmatprep.subr.msk.bf16.mxu0 %vm271_vm0, %v152_v61 }
  0x21   :  { %1235 = vmatprep.subr.msk.bf16.mxu1 %vm271_vm0, %v168_v63 }
  0x27   :  { %1160 = vmatpush3.bf16.xpose.msra.mxu0 %v294_v11 }
  0x28   :  { %1184 = vmatpush3.bf16.xpose.msra.mxu1 %v342_v13  ;;  %1228 = vmatprep.subr.msk.bf16.mxu0 %vm271_vm0, %v151_v12 }
  0x29   :  { %1236 = vmatprep.subr.msk.bf16.mxu1 %vm271_vm0, %v167_v14 }
  0x2f   :  { %1162 = vmatpush3.bf16.xpose.msra.mxu0 %v291_v29 }
  0x30   :  { %1186 = vmatpush3.bf16.xpose.msra.mxu1 %v339_v31  ;;  %1229 = vmatprep.subr.msk.bf16.mxu0 %vm271_vm0, %v150_v30 }
  0x31   :  { %1237 = vmatprep.subr.msk.bf16.mxu1 %vm271_vm0, %v166_v32 }
  0x32   :  { %8 = vsyncpa [#allocation3], 0  ;;  %v64_v42 = vld [vmem:[%s2083_s0 + $0x180] sm:$0xff]  ;;  %v65_v43 = vld [vmem:[%s2083_s0 + $0x188] sm:$0xff]  ;;  %1255 = vset.pattern.permute.xlu1 %v1303_v41  ;;  %814 = vperm.xlu0 %1254, %v1505_v19   ;;  %v288_v44 = vsel %vm271_vm0, %v142_v37, 0  ;;  %v149_v45 = vpack.c.bf16 %v33_v40, %v32_v39  ;;  %v336_v46 = vsel %vm271_vm0, %v158_v38, 0 }
  0x33   :  { %818 = vperm.xlu1 %1255, %v212_v27   ;;  %v165_v47 = vpack.c.bf16 %v65_v43, %v64_v42  ;;  %v16_v48 = vld [vmem:[%s2083_s0] sm:$0xff]  ;;  %v17_v49 = vld [vmem:[%s2083_s0 + $0x8] sm:$0xff]  ;;  %v110_v56 = vld [vmem:[%s2083_s0 + $0x2f0] sm:$0xff]  ;;  %v1304_v18 = vmov 2   ;;  %vm902_vm1 = vcmask 1041408   ;;  %vm989_vm2 = vcmask 850944  }
  0x34   :  { %v48_v50 = vld [vmem:[%s2083_s0 + $0x100] sm:$0xff]  ;;  %v49_v51 = vld [vmem:[%s2083_s0 + $0x108] sm:$0xff]  ;;  %v141_v53 = vpack.c.bf16 %v17_v49, %v16_v48  ;;  %v111_v57 = vld [vmem:[%s2083_s0 + $0x2f8] sm:$0xff]  ;;  %vm1001_vm3 = vcmask 844800  }
  0x35   :  { %v215_v52 = vld [vmem:[%s2085_s2 + $0x20] sm:$0xff]  ;;  %v157_v54 = vpack.c.bf16 %v49_v51, %v48_v50  ;;  %v216_v58 = vld [vmem:[%s2085_s2 + $0x28] sm:$0xff]  ;;  %v188_v60 = vpack.c.bf16 %v111_v57, %v110_v56  ;;  %v126_v62 = vld [vmem:[%s2083_s0 + $0x370] sm:$0xff] }
  0x36   :  { %822 = vperm.xlu0 %1254, %v213_v20   ;;  %v285_v59 = vsel %vm271_vm0, %v141_v53, 0  ;;  %v127_v63 = vld [vmem:[%s2083_s0 + $0x378] sm:$0xff]  ;;  %v217_v0 = vld [vmem:[%s2085_s2 + $0x30] sm:$0x3]  ;;  %v1611_v5 = vld [vmem:[%s2084_s1 + $0x8] sm:$0xff]  }
  0x37   :  { %1164 = vmatpush3.bf16.xpose.msra.mxu0 %v288_v44  ;;  %1256 = vset.pattern.permute.xlu1 %v1302_v7  ;;  %v333_v61 = vsel %vm271_vm0, %v157_v54, 0  ;;  %v94_v1 = vld [vmem:[%s2083_s0 + $0x270] sm:$0xff]  ;;  %v95_v2 = vld [vmem:[%s2083_s0 + $0x278] sm:$0xff]  ;;  %v196_v3 = vpack.c.bf16 %v127_v63, %v126_v62  ;;  %v108_v6 = vld [vmem:[%s2083_s0 + $0x2e0] sm:$0xff] }
  0x38   :  { %1188 = vmatpush3.bf16.xpose.msra.mxu1 %v336_v46  ;;  %1230 = vmatprep.subr.msk.bf16.mxu0 %vm271_vm0, %v149_v45  ;;  %v180_v4 = vpack.c.bf16 %v95_v2, %v94_v1  ;;  %v109_v8 = vld [vmem:[%s2083_s0 + $0x2e8] sm:$0xff]  ;;  %v124_v10 = vld [vmem:[%s2083_s0 + $0x360] sm:$0xff]  ;;  %v1646_v20 = vld [vmem:[%s2084_s1 + $0x10] sm:$0xff]  }
  0x39   :  { %1238 = vmatprep.subr.msk.bf16.mxu1 %vm271_vm0, %v165_v47  ;;  %240 = vperm.xlu1 %1256, %v215_v52   ;;  %v450_v9 = vsel %vm271_vm0, %v196_v3, 0  ;;  %v125_v11 = vld [vmem:[%s2083_s0 + $0x368] sm:$0xff]  ;;  %v187_v13 = vpack.c.bf16 %v109_v8, %v108_v6  ;;  %v92_v14 = vld [vmem:[%s2083_s0 + $0x260] sm:$0xff]  ;;  %v106_v21 = vld [vmem:[%s2083_s0 + $0x2d0] sm:$0xff] }
  0x3a   :  { %826 = vperm.xlu0 %1254, %v214_v28   ;;  %v402_v12 = vsel %vm271_vm0, %v180_v4, 0  ;;  %v93_v15 = vld [vmem:[%s2083_s0 + $0x268] sm:$0xff]  ;;  %v195_v16 = vpack.c.bf16 %v125_v11, %v124_v10  ;;  %v107_v22 = vld [vmem:[%s2083_s0 + $0x2d8] sm:$0xff]  ;;  %v122_v24 = vld [vmem:[%s2083_s0 + $0x350] sm:$0xff] }
  0x3b   :  { %v179_v17 = vpack.c.bf16 %v93_v15, %v92_v14  ;;  %v123_v25 = vld [vmem:[%s2083_s0 + $0x358] sm:$0xff]  ;;  %v186_v27 = vpack.c.bf16 %v107_v22, %v106_v21  ;;  %v104_v32 = vld [vmem:[%s2083_s0 + $0x2c0] sm:$0xff]  ;;  %v105_v33 = vld [vmem:[%s2083_s0 + $0x2c8] sm:$0xff] }
  0x3c   :  { %v447_v23 = vsel %vm271_vm0, %v195_v16, 0  ;;  %v91_v28 = vld [vmem:[%s2083_s0 + $0x258] sm:$0xff]  ;;  %v194_v29 = vpack.c.bf16 %v123_v25, %v122_v24  ;;  %v120_v35 = vld [vmem:[%s2083_s0 + $0x340] sm:$0xff]  ;;  %v121_v36 = vld [vmem:[%s2083_s0 + $0x348] sm:$0xff]  ;;  %v185_v38 = vpack.c.bf16 %v105_v33, %v104_v32 }
  0x3d   :  { %245 = vperm.xlu1 %1256, %v216_v58   ;;  %v399_v26 = vsel %vm271_vm0, %v179_v17, 0  ;;  %v1682_v31 = vld [vmem:[%s2084_s1 + $0x18] ss:$0 sps:$4 sm:$0x11]   ;;  %v88_v39 = vld [vmem:[%s2083_s0 + $0x240] sm:$0xff]  ;;  %v89_v40 = vld [vmem:[%s2083_s0 + $0x248] sm:$0xff] }
  0x3e   :  { %830 = vperm.xlu0 %1254, %v215_v52   ;;  %v444_v34 = vsel %vm271_vm0, %v194_v29, 0  ;;  %v177_v42 = vpack.c.bf16 %v89_v40, %v88_v39  ;;  %v102_v43 = vld [vmem:[%s2083_s0 + $0x2b0] sm:$0xff]  ;;  %v103_v44 = vld [vmem:[%s2083_s0 + $0x2b8] sm:$0xff]  ;;  %v100_v54 = vld [vmem:[%s2083_s0 + $0x2a0] sm:$0xff] }
  0x3f   :  { %1166 = vmatpush3.bf16.xpose.msra.mxu0 %v285_v59  ;;  %v118_v46 = vld [vmem:[%s2083_s0 + $0x330] sm:$0xff]  ;;  %v119_v47 = vld [vmem:[%s2083_s0 + $0x338] sm:$0xff]  ;;  %v184_v49 = vpack.c.bf16 %v103_v44, %v102_v43  ;;  %v101_v56 = vld [vmem:[%s2083_s0 + $0x2a8] sm:$0xff] }
  0x40   :  { %1190 = vmatpush3.bf16.xpose.msra.mxu1 %v333_v61  ;;  %1239 = vmatprep.subr.msk.bf16.mxu0 %vm271_vm0, %v188_v60  ;;  %v393_v48 = vsel %vm271_vm0, %v177_v42, 0  ;;  %v86_v50 = vld [vmem:[%s2083_s0 + $0x230] sm:$0xff]  ;;  %v87_v51 = vld [vmem:[%s2083_s0 + $0x238] sm:$0xff]  ;;  %v192_v52 = vpack.c.bf16 %v119_v47, %v118_v46  ;;  %v117_v59 = vld [vmem:[%s2083_s0 + $0x328] sm:$0xff]  ;;  %v183_v61 = vpack.c.bf16 %v101_v56, %v100_v54 }
  0x41   :  { %686 = vmatprep.subr.bf16.mxu1 %v1302_v7  ;;  %250 = vperm.xlu1 %1256, %v217_v0   ;;  %v176_v53 = vpack.c.bf16 %v87_v51, %v86_v50  ;;  %v84_v62 = vld [vmem:[%s2083_s0 + $0x220] sm:$0xff]  ;;  %v85_v63 = vld [vmem:[%s2083_s0 + $0x228] sm:$0xff]  ;;  %v98_v2 = vld [vmem:[%s2083_s0 + $0x290] sm:$0xff] }
  0x42   :  { %838 = vperm.xlu0 %1254, %v217_v0   ;;  %v438_v57 = vsel %vm271_vm0, %v192_v52, 0  ;;  %v175_v1 = vpack.c.bf16 %v85_v63, %v84_v62  ;;  %v99_v3 = vld [vmem:[%s2083_s0 + $0x298] sm:$0xff]  ;;  %v114_v6 = vld [vmem:[%s2083_s0 + $0x310] sm:$0xff]  ;;  %v96_v15 = vld [vmem:[%s2083_s0 + $0x280] sm:$0xff] }
  0x43   :  { %v390_v60 = vsel %vm271_vm0, %v176_v53, 0  ;;  %v115_v8 = vld [vmem:[%s2083_s0 + $0x318] sm:$0xff]  ;;  %v182_v10 = vpack.c.bf16 %v99_v3, %v98_v2  ;;  %v82_v11 = vld [vmem:[%s2083_s0 + $0x210] sm:$0xff]  ;;  %v97_v16 = vld [vmem:[%s2083_s0 + $0x288] sm:$0xff] }
  0x44   :  { %v113_v21 = vld [vmem:[%s2083_s0 + $0x308] sm:$0xff]  ;;  %v80_v24 = vld [vmem:[%s2083_s0 + $0x200] sm:$0xff]  ;;  %v138_v33 = vld [vmem:[%s2083_s0 + $0x3d0] sm:$0xff] }
  0x45   :  { %1257 = vset.pattern.permute.xlu1 %v1303_v41  ;;  %v193_v41 = vpack.c.bf16 %v121_v36, %v120_v35  ;;  %v81_v25 = vld [vmem:[%s2083_s0 + $0x208] sm:$0xff]  ;;  %v135_v42 = vld [vmem:[%s2083_s0 + $0x3b8] sm:$0xff]  ;;  %v128_v53 = vld [vmem:[%s2083_s0 + $0x380] sm:$0xff] }
  0x46   :  { %1168 = vmatmul.mubr.msk.bf16.vlgmr.msra.gmra.mxu0 %vm271_vm0, %v1444_v55  ;;  %834 = vperm.xlu1 %1257, %v216_v58   ;;  %v116_v58 = vld [vmem:[%s2083_s0 + $0x320] sm:$0xff]  ;;  %v133_v46 = vld [vmem:[%s2083_s0 + $0x3a8] sm:$0xff]  ;;  %v131_v50 = vld [vmem:[%s2083_s0 + $0x398] sm:$0xff] }
  0x47   :  { %1192 = vmatmul.mubr.msk.bf16.vlgmr.msra.gmra.mxu1 %vm271_vm0, %v1444_v55  ;;  %1169 = vmatprep.mubr.msk.bf16.mxu0 %vm271_vm0, %v1611_v5  ;;  %v441_v45 = vsel %vm271_vm0, %v193_v41, 0  ;;  %v191_v0 = vpack.c.bf16 %v117_v59, %v116_v58  ;;  %v134_v41 = vld [vmem:[%s2083_s0 + $0x3b0] sm:$0xff]  ;;  %v129_v54 = vld [vmem:[%s2083_s0 + $0x388] sm:$0xff] }
  0x48   :  { %687 = vmatpush1.bf16.xpose.msra.mxu1 %v450_v9  ;;  %1193 = vmatprep.mubr.msk.bf16.mxu1 %vm271_vm0, %v1611_v5  ;;  %v387_v9 = vsel %vm271_vm0, %v175_v1, 0  ;;  %v200_v43 = vpack.c.bf16 %v135_v42, %v134_v41  ;;  %v197_v56 = vpack.c.bf16 %v129_v54, %v128_v53 }
  0x49   :  { %688 = vmatprep.subr.bf16.mxu1 %v1302_v7  ;;  %1200 = vmatpush3.bf16.xpose.msra.mxu0 %v402_v12  ;;  %v435_v4 = vsel %vm271_vm0, %v191_v0, 0  ;;  %v83_v12 = vld [vmem:[%s2083_s0 + $0x218] sm:$0xff] }
  0x4a   :  { %1240 = vmatprep.subr.msk.bf16.mxu0 %vm271_vm0, %v187_v13  ;;  %1258 = vset.pattern.permute.xlu1 %v1304_v18  ;;  %v190_v13 = vpack.c.bf16 %v115_v8, %v114_v6  ;;  %v174_v14 = vpack.c.bf16 %v83_v12, %v82_v11  ;;  %v462_v44 = vsel %vm271_vm0, %v200_v43, 0 }
  0x4b   :  { %1011 = vperm.xlu1 %1258, %v1505_v19   ;;  %1259 = vset.pattern.permute.xlu0 %v1304_v18  ;;  %v90_v19 = vld [vmem:[%s2083_s0 + $0x250] sm:$0xff]  ;;  %v112_v18 = vld [vmem:[%s2083_s0 + $0x300] sm:$0xff] }
  0x4c   :  { %v178_v30 = vpack.c.bf16 %v91_v28, %v90_v19  ;;  %v432_v17 = vsel %vm271_vm0, %v190_v13, 0  ;;  %v384_v22 = vsel %vm271_vm0, %v174_v14, 0  ;;  %v140_v28 = vld [vmem:[%s2083_s0 + $0x3e0] sm:$0xff] }
  0x4e   :  { %1170 = vmatmul.mubr.msk.bf16.gmra.mxu0 %vm271_vm0, %v1611_v5  ;;  %v396_v37 = vsel %vm271_vm0, %v178_v30, 0  ;;  %v203_v30 = vpack.c.bf16 %v140_v28, %v140_v28 }
  0x4f   :  { %1194 = vmatmul.mubr.msk.bf16.gmra.mxu1 %vm271_vm0, %v1611_v5  ;;  %1171 = vmatprep.mubr.msk.bf16.mxu0 %vm271_vm0, %v1646_v20 }
  0x50   :  { %689 = vmatpush1.bf16.xpose.msra.mxu1 %v447_v23  ;;  %1195 = vmatprep.mubr.msk.bf16.mxu1 %vm271_vm0, %v1646_v20  ;;  %v181_v23 = vpack.c.bf16 %v97_v16, %v96_v15  ;;  %v471_v32 = vsel %vm271_vm0, %v203_v30, 0 }
  0x51   :  { %690 = vmatprep.subr.bf16.mxu1 %v1302_v7  ;;  %1202 = vmatpush3.bf16.xpose.msra.mxu0 %v399_v26  ;;  %v189_v26 = vpack.c.bf16 %v113_v21, %v112_v18 }
  0x52   :  { %1241 = vmatprep.subr.msk.bf16.mxu0 %vm271_vm0, %v186_v27  ;;  %v173_v27 = vpack.c.bf16 %v81_v25, %v80_v24 }
  0x53   :  { %v429_v19 = vsel %vm271_vm0, %v189_v26, 0 }
  0x54   :  { %v381_v29 = vsel %vm271_vm0, %v173_v27, 0 }
  0x56   :  { %1172 = vmatmul.mubr.msk.bf16.gmra.mxu0 %vm271_vm0, %v1646_v20 }
  0x57   :  { %1196 = vmatmul.mubr.msk.bf16.gmra.mxu1 %vm271_vm0, %v1646_v20  ;;  %1173 = vmatprep.mubr.msk.bf16.mxu0 %vm271_vm0, %v1682_v31 }
  0x58   :  { %691 = vmatpush1.bf16.xpose.msra.mxu1 %v444_v34  ;;  %1197 = vmatprep.mubr.msk.bf16.mxu1 %vm271_vm0, %v1682_v31  ;;  %v139_v34 = vld [vmem:[%s2083_s0 + $0x3d8] sm:$0xff] }
  0x59   :  { %692 = vmatprep.subr.bf16.mxu1 %v1302_v7  ;;  %1204 = vmatpush3.bf16.xpose.msra.mxu0 %v396_v37  ;;  %v202_v35 = vpack.c.bf16 %v139_v34, %v138_v33  ;;  %v136_v37 = vld [vmem:[%s2083_s0 + $0x3c0] sm:$0xff] }
  0x5a   :  { %1242 = vmatprep.subr.msk.bf16.mxu0 %vm271_vm0, %v185_v38  ;;  %v137_v38 = vld [vmem:[%s2083_s0 + $0x3c8] sm:$0xff] }
  0x5b   :  { %v468_v36 = vsel %vm271_vm0, %v202_v35, 0  ;;  %v201_v39 = vpack.c.bf16 %v137_v38, %v136_v37 }
  0x5d   :  { %v465_v40 = vsel %vm271_vm0, %v201_v39, 0 }
  0x5e   :  { %1174 = vmatmul.mubr.msk.bf16.gmra.mxu0 %vm271_vm0, %v1682_v31 }
  0x5f   :  { %1198 = vmatmul.mubr.msk.bf16.gmra.mxu1 %vm271_vm0, %v1682_v31  ;;  %1215 = vmatprep.mubr.msk.bf16.mxu0 %vm271_vm0, %v1444_v55 }
  0x60   :  { %693 = vmatpush1.bf16.xpose.msra.mxu1 %v441_v45  ;;  %718 = vmatprep.mubr.bf16.mxu1 %v1302_v7  ;;  %v132_v45 = vld [vmem:[%s2083_s0 + $0x3a0] sm:$0xff] }
  0x61   :  { %694 = vmatprep.subr.bf16.mxu1 %v1302_v7  ;;  %1206 = vmatpush3.bf16.xpose.msra.mxu0 %v393_v48  ;;  %v199_v47 = vpack.c.bf16 %v133_v46, %v132_v45 }
  0x62   :  { %1243 = vmatprep.subr.msk.bf16.mxu0 %vm271_vm0, %v184_v49  ;;  %v130_v49 = vld [vmem:[%s2083_s0 + $0x390] sm:$0xff]  ;;  %s1306_s0 = smov [#allocation2]  }
  0x63   :  { %v459_v48 = vsel %vm271_vm0, %v199_v47, 0  ;;  %v198_v51 = vpack.c.bf16 %v131_v50, %v130_v49  ;;  %s1123_s6 = sshll.u32 %s1306_s0, 4  ;;  %s1124_s6 = int_to_ptr.vmem [resolvable:$true] %s1123_s6 }
  0x64   :  { %s1280_s7 = scalar_lea.vmem %s1124_s6, 128  ;;  %p1285_p1 = scmp.lt.s32.totalorder %s1124_s6, %s1124_s6 }
  0x65   :  { %v456_v52 = vsel %vm271_vm0, %v198_v51, 0  ;;  %p1281_p0 = scmp.ne.s32.totalorder %s1124_s6, %s1280_s7  ;;  %p1286_p2 = scmp.lt.s32.totalorder %s1280_s7, %s1280_s7 }
  0x67   :  { %p1287_p3 = por %p1286_p2, %p1285_p1 }
  0x68   :  { %695 = vmatpush1.bf16.xpose.msra.mxu1 %v438_v57  ;;  %v453_v57 = vsel %vm271_vm0, %v197_v56, 0 }
  0x69   :  { %696 = vmatprep.subr.bf16.mxu1 %v1302_v7  ;;  %1208 = vmatpush3.bf16.xpose.msra.mxu0 %v390_v60  ;;  %p1288_p4 = pnand %p1287_p3, %p1281_p0 }
  0x6a   :  { %1244 = vmatprep.subr.msk.bf16.mxu0 %vm271_vm0, %v183_v61 }
  0x70   :  { %697 = vmatpush1.bf16.xpose.msra.mxu1 %v435_v4 }
  0x71   :  { %698 = vmatprep.subr.bf16.mxu1 %v1302_v7  ;;  %1210 = vmatpush3.bf16.xpose.msra.mxu0 %v387_v9 }
  0x72   :  { %1245 = vmatprep.subr.msk.bf16.mxu0 %vm271_vm0, %v182_v10 }
  0x78   :  { %699 = vmatpush1.bf16.xpose.msra.mxu1 %v432_v17 }
  0x79   :  { %700 = vmatprep.subr.bf16.mxu1 %v1302_v7  ;;  %1212 = vmatpush3.bf16.xpose.msra.mxu0 %v384_v22 }
  0x7a   :  { %1246 = vmatprep.subr.msk.bf16.mxu0 %vm271_vm0, %v181_v23 }
  0x80   :  { %701 = vmatpush1.bf16.xpose.msra.mxu1 %v429_v19 }
  0x81   :  { %704 = vmatprep.subr.bf16.mxu1 %v1302_v7  ;;  %1214 = vmatpush3.bf16.xpose.msra.mxu0 %v381_v29 }
  0x88   :  { %705 = vmatpush2.bf16.xpose.msra.mxu1 %v471_v32  ;;  %1216 = vmatmul.mubr.msk.bf16.vlgmr.msra.gmra.mxu0 %vm271_vm0, %v1444_v55 }
  0x89   :  { %706 = vmatprep.subr.bf16.mxu1 %v1302_v7  ;;  %1217 = vmatprep.mubr.msk.bf16.mxu0 %vm271_vm0, %v1611_v5 }
  0x8c   :  { %v1889_v58 = vpop.permute.xlu1 %230 }
  0x8e   :  { %v1891_v59 = vpop.permute.xlu0 %220 }
  0x90   :  { %707 = vmatpush2.bf16.xpose.msra.mxu1 %v468_v36  ;;  %1218 = vmatmul.mubr.msk.bf16.gmra.mxu0 %vm271_vm0, %v1611_v5 }
  0x91   :  { %708 = vmatprep.subr.bf16.mxu1 %v1302_v7  ;;  %1219 = vmatprep.mubr.msk.bf16.mxu0 %vm271_vm0, %v1646_v20 }
  0x92   :  { %v1895_v60 = vpop.permute.xlu0 %225 }
  0x98   :  { %709 = vmatpush2.bf16.xpose.msra.mxu1 %v465_v40  ;;  %1220 = vmatmul.mubr.msk.bf16.gmra.mxu0 %vm271_vm0, %v1646_v20 }
  0x99   :  { %710 = vmatprep.subr.bf16.mxu1 %v1302_v7  ;;  %1221 = vmatprep.mubr.msk.bf16.mxu0 %vm271_vm0, %v1682_v31 }
  0xa0   :  { %711 = vmatpush2.bf16.xpose.msra.mxu1 %v462_v44  ;;  %1222 = vmatmul.mubr.msk.bf16.gmra.mxu0 %vm271_vm0, %v1682_v31 }
  0xa1   :  { %712 = vmatprep.subr.bf16.mxu1 %v1302_v7 }
  0xa8   :  { %713 = vmatpush2.bf16.xpose.msra.mxu1 %v459_v48 }
  0xa9   :  { %714 = vmatprep.subr.bf16.mxu1 %v1302_v7 }
  0xad   :  { %v1902_v2 = vpop.permute.xlu0 %814 }
  0xb0   :  { %715 = vmatpush2.bf16.xpose.msra.mxu1 %v456_v52 }
  0xb1   :  { %716 = vmatprep.subr.bf16.mxu1 %v1302_v7  ;;  %v1911_v21 = vpop.permute.xlu0 %822 }
  0xb5   :  { %v1929_v52 = vpop.permute.xlu0 %826 }
  0xb8   :  { %717 = vmatpush2.bf16.xpose.msra.mxu1 %v453_v57 }
  0xbf   :  { %1147 = vmatmul.mubr.msk.bf16.vlgmr.msra.gmra.mxu1 %vm271_vm0, %v1444_v55  ;;  %v1893_v55 = vpop.permute.xlu1 %235 }
  0xc0   :  { %728 = vmatprep.mubr.bf16.mxu1 %v1302_v7 }
  0xc3   :  { %v1897_v61 = vpop.permute.xlu1 %818 }
  0xc7   :  { %1148 = vmatmul.mubr.msk.bf16.gmra.mxu1 %vm271_vm0, %v1611_v5  ;;  %v1906_v11 = vpop.permute.xlu1 %240 }
  0xc8   :  { %738 = vmatprep.mubr.bf16.mxu1 %v1302_v7 }
  0xcb   :  { %v1923_v41 = vpop.permute.xlu1 %245 }
  0xcf   :  { %1149 = vmatmul.mubr.msk.bf16.gmra.mxu1 %vm271_vm0, %v1646_v20 }
  0xd0   :  { %748 = vmatprep.mubr.bf16.mxu1 %v1302_v7 }
  0xd7   :  { %1150 = vmatmul.mubr.msk.bf16.gmra.mxu1 %vm271_vm0, %v1682_v31 }
 0x106   :  { %v507_v5 = vpop.f32.mrf.mxu0 }
 0x107   :  { %v508_v62 = vadd.f32 %v507_v5, %v1891_v59  ;;  %v578_v63 = vpop.f32.mrf.mxu1 }
 0x108   :  { %v579_v20 = vadd.f32 %v578_v63, %v1891_v59  ;;  %v509_v7 = vpop.f32.mrf.mxu0 }
 0x109   :  { %v757_v0 = vmax.f32 %v508_v62, 0.0  ;;  %v510_v31 = vadd.f32 %v509_v7, %v1891_v59  ;;  %v580_v1 = vpop.f32.mrf.mxu1 }
 0x10a   :  { %v759_v3 = vmax.f32 %v579_v20, 0.0  ;;  %v581_v4 = vadd.f32 %v580_v1, %v1891_v59  ;;  %v511_v6 = vpop.f32.mrf.mxu0 }
 0x10b   :  { %v758_v8 = vmax.f32 %v510_v31, 0.0  ;;  %v512_v9 = vadd.f32 %v511_v6, %v1895_v60  ;;  %v582_v10 = vpop.f32.mrf.mxu1  ;;  %v841_v16 = vmul.f32 %v1902_v2, %v757_v0 }
 0x10c   :  { %v760_v12 = vmax.f32 %v581_v4, 0.0  ;;  %v583_v13 = vadd.f32 %v582_v10, %v1895_v60  ;;  %v513_v14 = vpop.f32.mrf.mxu0  ;;  %v843_v23 = vmul.f32 %v1902_v2, %v759_v3 }
 0x10d   :  { %v765_v15 = vmax.f32 %v512_v9, 0.0  ;;  %v514_v17 = vadd.f32 %v513_v14, %v1895_v60  ;;  %v584_v18 = vpop.f32.mrf.mxu1  ;;  %v842_v26 = vmul.f32 %v1902_v2, %v758_v8  ;;  %v1939_v14 = vpop.permute.xlu1 %250 }
 0x10e   :  { %v767_v22 = vmax.f32 %v583_v13, 0.0  ;;  %v585_v24 = vadd.f32 %v584_v18, %v1895_v60  ;;  %v517_v25 = vpop.f32.mrf.mxu0  ;;  %v844_v30 = vmul.f32 %v1902_v2, %v760_v12 }
 0x10f   :  { %v766_v27 = vmax.f32 %v514_v17, 0.0  ;;  %v849_v19 = vmul.f32 %v1897_v61, %v765_v15  ;;  %v518_v28 = vadd.f32 %v517_v25, %v1889_v58  ;;  %v588_v29 = vpop.f32.mrf.mxu1 }
 0x110   :  { %v768_v32 = vmax.f32 %v585_v24, 0.0  ;;  %v851_v33 = vmul.f32 %v1897_v61, %v767_v22  ;;  %v589_v34 = vadd.f32 %v588_v29, %v1889_v58  ;;  %v519_v35 = vpop.f32.mrf.mxu0 }
 0x111   :  { %v850_v36 = vmul.f32 %v1897_v61, %v766_v27  ;;  %v897_v37 = vadd.f32 %v849_v19, %v841_v16  ;;  %v773_v38 = vmax.f32 %v518_v28, 0.0  ;;  %v520_v39 = vadd.f32 %v519_v35, %v1889_v58  ;;  %v590_v40 = vpop.f32.mrf.mxu1  ;;  %v1945_v19 = vpop.permute.xlu0 %830 }
 0x112   :  { %v852_v42 = vmul.f32 %v1897_v61, %v768_v32  ;;  %v924_v43 = vadd.f32 %v851_v33, %v843_v23  ;;  %v775_v44 = vmax.f32 %v589_v34, 0.0  ;;  %v591_v45 = vadd.f32 %v590_v40, %v1889_v58  ;;  %v521_v46 = vpop.f32.mrf.mxu0 }
 0x113   :  { %v911_v47 = vadd.f32 %v850_v36, %v842_v26  ;;  %v774_v48 = vmax.f32 %v520_v39, 0.0  ;;  %v857_v49 = vmul.f32 %v1911_v21, %v773_v38  ;;  %v522_v50 = vadd.f32 %v521_v46, %v1893_v55  ;;  %v592_v51 = vpop.f32.mrf.mxu1 }
 0x114   :  { %v937_v53 = vadd.f32 %v852_v42, %v844_v30  ;;  %v776_v54 = vmax.f32 %v591_v45, 0.0  ;;  %v859_v56 = vmul.f32 %v1911_v21, %v775_v44  ;;  %v593_v57 = vadd.f32 %v592_v51, %v1893_v55  ;;  %v523_v5 = vpop.f32.mrf.mxu0 }
 0x115   :  { %v858_v62 = vmul.f32 %v1911_v21, %v774_v48  ;;  %v898_v63 = vadd.f32 %v897_v37, %v857_v49  ;;  %v781_v20 = vmax.f32 %v522_v50, 0.0  ;;  %v524_v7 = vadd.f32 %v523_v5, %v1893_v55  ;;  %v594_v0 = vpop.f32.mrf.mxu1  ;;  %v1955_v50 = vpop.permute.xlu1 %834 }
 0x116   :  { %v860_v31 = vmul.f32 %v1911_v21, %v776_v54  ;;  %v925_v1 = vadd.f32 %v924_v43, %v859_v56  ;;  %v783_v3 = vmax.f32 %v593_v57, 0.0  ;;  %v595_v4 = vadd.f32 %v594_v0, %v1893_v55  ;;  %v527_v6 = vpop.f32.mrf.mxu0 }
 0x117   :  { %v912_v8 = vadd.f32 %v911_v47, %v858_v62  ;;  %v782_v9 = vmax.f32 %v524_v7, 0.0  ;;  %v865_v10 = vmul.f32 %v1929_v52, %v781_v20  ;;  %v528_v12 = vadd.f32 %v527_v6, %v1906_v11  ;;  %v598_v13 = vpop.f32.mrf.mxu1 }
 0x118   :  { %v938_v15 = vadd.f32 %v937_v53, %v860_v31  ;;  %v784_v16 = vmax.f32 %v595_v4, 0.0  ;;  %v867_v17 = vmul.f32 %v1929_v52, %v783_v3  ;;  %v599_v18 = vadd.f32 %v598_v13, %v1906_v11  ;;  %v529_v22 = vpop.f32.mrf.mxu0  ;;  %v1965_v13 = vpop.permute.xlu0 %838 }
 0x119   :  { %v866_v23 = vmul.f32 %v1929_v52, %v782_v9  ;;  %v899_v24 = vadd.f32 %v898_v63, %v865_v10  ;;  %v789_v25 = vmax.f32 %v528_v12, 0.0  ;;  %v530_v26 = vadd.f32 %v529_v22, %v1906_v11  ;;  %v600_v27 = vpop.f32.mrf.mxu1 }
 0x11a   :  { %v868_v28 = vmul.f32 %v1929_v52, %v784_v16  ;;  %v926_v29 = vadd.f32 %v925_v1, %v867_v17  ;;  %v791_v30 = vmax.f32 %v599_v18, 0.0  ;;  %v601_v32 = vadd.f32 %v600_v27, %v1906_v11  ;;  %v531_v33 = vpop.f32.mrf.mxu0 }
 0x11b   :  { %v913_v34 = vadd.f32 %v912_v8, %v866_v23  ;;  %v790_v35 = vmax.f32 %v530_v26, 0.0  ;;  %v873_v36 = vmul.f32 %v1945_v19, %v789_v25  ;;  %v532_v37 = vadd.f32 %v531_v33, %v1923_v41  ;;  %v602_v38 = vpop.f32.mrf.mxu1 }
 0x11c   :  { %v939_v39 = vadd.f32 %v938_v15, %v868_v28  ;;  %v792_v40 = vmax.f32 %v601_v32, 0.0  ;;  %v875_v42 = vmul.f32 %v1945_v19, %v791_v30  ;;  %v603_v43 = vadd.f32 %v602_v38, %v1923_v41  ;;  %v533_v44 = vpop.f32.mrf.mxu0 }
 0x11d   :  { %v874_v45 = vmul.f32 %v1945_v19, %v790_v35  ;;  %v900_v46 = vadd.f32 %v899_v24, %v873_v36  ;;  %v797_v47 = vmax.f32 %v532_v37, 0.0  ;;  %v534_v48 = vadd.f32 %v533_v44, %v1923_v41  ;;  %v604_v49 = vpop.f32.mrf.mxu1 }
 0x11e   :  { %v876_v51 = vmul.f32 %v1945_v19, %v792_v40  ;;  %v927_v53 = vadd.f32 %v926_v29, %v875_v42  ;;  %v799_v54 = vmax.f32 %v603_v43, 0.0  ;;  %v605_v56 = vadd.f32 %v604_v49, %v1923_v41  ;;  %v537_v57 = vpop.f32.mrf.mxu0 }
 0x11f   :  { %v914_v5 = vadd.f32 %v913_v34, %v874_v45  ;;  %v798_v62 = vmax.f32 %v534_v48, 0.0  ;;  %v881_v63 = vmul.f32 %v1955_v50, %v797_v47  ;;  %v538_v20 = vadd.f32 %v537_v57, %v1939_v14  ;;  %v608_v7 = vpop.f32.mrf.mxu1 }
 0x120   :  { %v940_v0 = vadd.f32 %v939_v39, %v876_v51  ;;  %v800_v31 = vmax.f32 %v605_v56, 0.0  ;;  %v883_v1 = vmul.f32 %v1955_v50, %v799_v54  ;;  %v609_v3 = vadd.f32 %v608_v7, %v1939_v14  ;;  %v539_v4 = vpop.f32.mrf.mxu0 }
 0x121   :  { %v882_v6 = vmul.f32 %v1955_v50, %v798_v62  ;;  %v901_v8 = vadd.f32 %v900_v46, %v881_v63  ;;  %v805_v9 = vmax.f32 %v538_v20, 0.0  ;;  %v540_v10 = vadd.f32 %v539_v4, %v1939_v14  ;;  %v610_v12 = vpop.f32.mrf.mxu1 }
 0x122   :  { %v884_v15 = vmul.f32 %v1955_v50, %v800_v31  ;;  %v928_v16 = vadd.f32 %v927_v53, %v883_v1  ;;  %v807_v17 = vmax.f32 %v609_v3, 0.0  ;;  %v611_v18 = vadd.f32 %v610_v12, %v1939_v14  ;;  %v541_v22 = vpop.f32.mrf.mxu0  ;;  %v1977_v1 = vpop.permute.xlu1 %1011 }
 0x123   :  { %v915_v23 = vadd.f32 %v914_v5, %v882_v6  ;;  %v806_v24 = vmax.f32 %v540_v10, 0.0  ;;  %v889_v25 = vmul.f32 %v1965_v13, %v805_v9  ;;  %v612_v26 = vpop.f32.mrf.mxu1 }
 0x124   :  { %v941_v27 = vadd.f32 %v940_v0, %v884_v15  ;;  %v808_v28 = vmax.f32 %v611_v18, 0.0  ;;  %v891_v29 = vmul.f32 %v1965_v13, %v807_v17  ;;  %v542_v30 = vpop.f32.mrf.mxu0 }
 0x125   :  { %v890_v32 = vmul.f32 %v1965_v13, %v806_v24  ;;  %v903_v33 = vsel %vm902_vm1, %v889_v25, 0.0  ;;  %v613_v34 = vpop.f32.mrf.mxu1  ;;  %v1305_v25 = vmov 1966171168  }
 0x126   :  { %v892_v35 = vmul.f32 %v1965_v13, %v808_v28  ;;  %v904_v36 = vadd.f32 %v903_v33, %v901_v8  ;;  %v929_v37 = vsel %vm902_vm1, %v891_v29, 0.0  ;;  %v1067_v26 = vunpack.c.l.s4 %v1305_v25 }
 0x127   :  { %v916_v38 = vsel %vm902_vm1, %v890_v32, 0.0  ;;  %v930_v39 = vadd.f32 %v929_v37, %v928_v16 }
 0x128   :  { %v905_v40 = vrot.slane %v904_v36, 4  ;;  %v917_v42 = vadd.f32 %v916_v38, %v915_v23  ;;  %v942_v43 = vsel %vm902_vm1, %v892_v35, 0.0  ;;  %v1068_v32 = vunpack.c.0.s8 %v1067_v26 }
 0x129   :  { %v931_v44 = vrot.slane %v930_v39, 4  ;;  %v943_v45 = vadd.f32 %v942_v43, %v941_v27  ;;  %v1069_v27 = vlaneseq }
 0x12a   :  { %v906_v46 = vadd.f32 %v905_v40, %v904_v36  ;;  %v918_v47 = vrot.slane %v917_v42, 4 }
 0x12b   :  { %v932_v48 = vadd.f32 %v931_v44, %v930_v39  ;;  %v944_v49 = vrot.slane %v943_v45, 4  ;;  %v1070_v33 = vshrl.u32 %v1069_v27, 7  ;;  %vm1114_vm4 = vcmp.lt.s32.totalorder %v1069_v27, 1000 }
 0x12c   :  { %v907_v51 = vrot.slane %v906_v46, 2  ;;  %v919_v53 = vadd.f32 %v918_v47, %v917_v42 }
 0x12d   :  { %v933_v54 = vrot.slane %v932_v48, 2  ;;  %v945_v56 = vadd.f32 %v944_v49, %v943_v45  ;;  %v1985_v45 = vsub.s32 %v1068_v32, %v1070_v33 }
 0x12e   :  { %v908_v57 = vadd.f32 %v907_v51, %v906_v46  ;;  %v920_v5 = vrot.slane %v919_v53, 2 }
 0x12f   :  { %v934_v62 = vadd.f32 %v933_v54, %v932_v48  ;;  %v946_v63 = vrot.slane %v945_v56, 2 }
 0x130   :  { %v909_v20 = vrot.slane %v908_v57, 1  ;;  %v921_v7 = vadd.f32 %v920_v5, %v919_v53 }
 0x131   :  { %v935_v0 = vrot.slane %v934_v62, 1  ;;  %v947_v31 = vadd.f32 %v946_v63, %v945_v56 }
 0x132   :  { %v910_v3 = vadd.f32 %v909_v20, %v908_v57  ;;  %v922_v4 = vrot.slane %v921_v7, 1 }
 0x133   :  { %v936_v6 = vadd.f32 %v935_v0, %v934_v62  ;;  %v948_v8 = vrot.slane %v947_v31, 1 }
 0x134   :  { %v923_v9 = vadd.f32 %v922_v4, %v921_v7  ;;  %v1014_v10 = vadd.f32 %v1977_v1, %v910_v3 }
 0x135   :  { %v949_v12 = vadd.f32 %v948_v8, %v947_v31  ;;  %v1016_v15 = vadd.f32 %v1977_v1, %v936_v6 }
 0x136   :  { %v1015_v16 = vadd.f32 %v1977_v1, %v923_v9  ;;  %v1022_v17 = vmul.f32 0.5, %v1014_v10 }
 0x137   :  { %v1017_v18 = vadd.f32 %v1977_v1, %v949_v12  ;;  %v1024_v22 = vmul.f32 0.5, %v1016_v15 }
 0x138   :  { %v1023_v23 = vmul.f32 0.5, %v1015_v16  ;;  %1264 = vtanh.f32 %v1022_v17 }
 0x139   :  { %v1025_v24 = vmul.f32 0.5, %v1017_v18  ;;  %1266 = vtanh.f32 %v1024_v22 }
 0x13a   :  { %1268 = vtanh.f32 %v1023_v23 }
 0x13b   :  { %1270 = vtanh.f32 %v1025_v24 }
 0x145   :  { %v1265_v28 = vpop.eup %1264 }
 0x146   :  { %v1267_v29 = vpop.eup %1266  ;;  %v1038_v30 = vadd.f32 1.0, %v1265_v28 }
 0x147   :  { %v1269_v34 = vpop.eup %1268  ;;  %v1040_v35 = vadd.f32 1.0, %v1267_v29 }
 0x148   :  { %v1271_v36 = vpop.eup %1270  ;;  %v649_v37 = vpop.f32.mrf.mxu0  ;;  %v1039_v38 = vadd.f32 1.0, %v1269_v34  ;;  %v1046_v39 = vmul.f32 0.5, %v1038_v30 }
 0x149   :  { %v650_v40 = vadd.f32 %v649_v37, %v1891_v59  ;;  %v1041_v42 = vadd.f32 1.0, %v1271_v36  ;;  %v1048_v48 = vmul.f32 0.5, %v1040_v35 }
 0x14a   :  { %v651_v43 = vpop.f32.mrf.mxu0  ;;  %v1047_v44 = vmul.f32 0.5, %v1039_v38 }
 0x14b   :  { %v761_v46 = vmax.f32 %v650_v40, 0.0  ;;  %v652_v47 = vadd.f32 %v651_v43, %v1891_v59  ;;  %v1049_v49 = vmul.f32 0.5, %v1041_v42 }
 0x14c   :  { %v653_v51 = vpop.f32.mrf.mxu0  ;;  %v1062_v53 = vcombine.low %v1046_v39, %v1047_v44 }
 0x14d   :  { %v762_v54 = vmax.f32 %v652_v47, 0.0  ;;  %v654_v56 = vadd.f32 %v653_v51, %v1895_v60  ;;  %v1063_v57 = vcombine.low %v1048_v48, %v1049_v49  ;;  %v845_v63 = vmul.f32 %v1902_v2, %v761_v46 }
 0x14e   :  { %v655_v5 = vpop.f32.mrf.mxu0  ;;  %v1990_v62 = vrot.slane %v1062_v53, %v1985_v45 }
 0x14f   :  { %v769_v20 = vmax.f32 %v654_v56, 0.0  ;;  %v656_v7 = vadd.f32 %v655_v5, %v1895_v60  ;;  %v1995_v0 = vrot.slane %v1063_v57, %v1985_v45  ;;  %v846_v31 = vmul.f32 %v1902_v2, %v762_v54 }
 0x150   :  { %v659_v3 = vpop.f32.mrf.mxu0 }
 0x151   :  { %v853_v4 = vmul.f32 %v1897_v61, %v769_v20  ;;  %v770_v6 = vmax.f32 %v656_v7, 0.0  ;;  %v660_v8 = vadd.f32 %v659_v3, %v1889_v58  ;;  %v1094_v9 = vcombine.low %v1990_v62, %v1995_v0 }
 0x152   :  { %v661_v10 = vpop.f32.mrf.mxu0 }
 0x153   :  { %v950_v12 = vadd.f32 %v853_v4, %v845_v63  ;;  %v854_v15 = vmul.f32 %v1897_v61, %v770_v6  ;;  %v777_v16 = vmax.f32 %v660_v8, 0.0  ;;  %v662_v17 = vadd.f32 %v661_v10, %v1889_v58 }
 0x154   :  { %v663_v18 = vpop.f32.mrf.mxu0 }
 0x155   :  { %v963_v22 = vadd.f32 %v854_v15, %v846_v31  ;;  %v861_v23 = vmul.f32 %v1911_v21, %v777_v16  ;;  %v778_v24 = vmax.f32 %v662_v17, 0.0  ;;  %v664_v25 = vadd.f32 %v663_v18, %v1893_v55 }
 0x156   :  { %v665_v26 = vpop.f32.mrf.mxu0 }
 0x157   :  { %v951_v28 = vadd.f32 %v950_v12, %v861_v23  ;;  %v862_v29 = vmul.f32 %v1911_v21, %v778_v24  ;;  %v785_v30 = vmax.f32 %v664_v25, 0.0  ;;  %v666_v32 = vadd.f32 %v665_v26, %v1893_v55 }
 0x158   :  { %v669_v33 = vpop.f32.mrf.mxu0 }
 0x159   :  { %v964_v34 = vadd.f32 %v963_v22, %v862_v29  ;;  %v869_v35 = vmul.f32 %v1929_v52, %v785_v30  ;;  %v786_v36 = vmax.f32 %v666_v32, 0.0  ;;  %v670_v37 = vadd.f32 %v669_v33, %v1906_v11 }
 0x15a   :  { %v671_v38 = vpop.f32.mrf.mxu0 }
 0x15b   :  { %v952_v39 = vadd.f32 %v951_v28, %v869_v35  ;;  %v870_v40 = vmul.f32 %v1929_v52, %v786_v36  ;;  %v793_v42 = vmax.f32 %v670_v37, 0.0  ;;  %v672_v43 = vadd.f32 %v671_v38, %v1906_v11 }
 0x15c   :  { %v673_v44 = vpop.f32.mrf.mxu0 }
 0x15d   :  { %v877_v46 = vmul.f32 %v1945_v19, %v793_v42  ;;  %v794_v47 = vmax.f32 %v672_v43, 0.0  ;;  %v674_v48 = vadd.f32 %v673_v44, %v1923_v41  ;;  %v965_v49 = vadd.f32 %v964_v34, %v870_v40 }
 0x15e   :  { %v675_v51 = vpop.f32.mrf.mxu0 }
 0x15f   :  { %v878_v53 = vmul.f32 %v1945_v19, %v794_v47  ;;  %v801_v54 = vmax.f32 %v674_v48, 0.0  ;;  %v676_v56 = vadd.f32 %v675_v51, %v1923_v41  ;;  %v953_v57 = vadd.f32 %v952_v39, %v877_v46 }
 0x160   :  { %v679_v5 = vpop.f32.mrf.mxu0 }
 0x161   :  { %v885_v63 = vmul.f32 %v1955_v50, %v801_v54  ;;  %v802_v20 = vmax.f32 %v676_v56, 0.0  ;;  %v680_v7 = vadd.f32 %v679_v5, %v1939_v14  ;;  %v966_v31 = vadd.f32 %v965_v49, %v878_v53 }
 0x162   :  { %v681_v3 = vpop.f32.mrf.mxu0 }
 0x163   :  { %v886_v4 = vmul.f32 %v1955_v50, %v802_v20  ;;  %v809_v6 = vmax.f32 %v680_v7, 0.0  ;;  %v682_v8 = vadd.f32 %v681_v3, %v1939_v14  ;;  %v954_v10 = vadd.f32 %v953_v57, %v885_v63 }
 0x164   :  { %v683_v12 = vpop.f32.mrf.mxu0 }
 0x165   :  { %v893_v15 = vmul.f32 %v1965_v13, %v809_v6  ;;  %v810_v16 = vmax.f32 %v682_v8, 0.0  ;;  %v967_v17 = vadd.f32 %v966_v31, %v886_v4 }
 0x166   :  { %v684_v18 = vpop.f32.mrf.mxu0 }
 0x167   :  { %v955_v22 = vsel %vm902_vm1, %v893_v15, 0.0  ;;  %v894_v23 = vmul.f32 %v1965_v13, %v810_v16 }
 0x168   :  { %v956_v24 = vadd.f32 %v955_v22, %v954_v10 }
 0x169   :  { %v968_v25 = vsel %vm902_vm1, %v894_v23, 0.0 }
 0x16a   :  { %v957_v26 = vrot.slane %v956_v24, 4  ;;  %v969_v28 = vadd.f32 %v968_v25, %v967_v17 }
 0x16c   :  { %v958_v29 = vadd.f32 %v957_v26, %v956_v24  ;;  %v970_v30 = vrot.slane %v969_v28, 4 }
 0x16e   :  { %v959_v32 = vrot.slane %v958_v29, 2  ;;  %v971_v33 = vadd.f32 %v970_v30, %v969_v28 }
 0x170   :  { %v960_v34 = vadd.f32 %v959_v32, %v958_v29  ;;  %v972_v35 = vrot.slane %v971_v33, 2 }
 0x172   :  { %v961_v36 = vrot.slane %v960_v34, 1  ;;  %v973_v37 = vadd.f32 %v972_v35, %v971_v33 }
 0x174   :  { %v962_v38 = vadd.f32 %v961_v36, %v960_v34  ;;  %v974_v39 = vrot.slane %v973_v37, 1 }
 0x176   :  { %v1018_v40 = vadd.f32 %v1977_v1, %v962_v38  ;;  %v975_v42 = vadd.f32 %v974_v39, %v973_v37 }
 0x178   :  { %v1026_v43 = vmul.f32 0.5, %v1018_v40  ;;  %v1019_v44 = vadd.f32 %v1977_v1, %v975_v42 }
 0x17a   :  { %1272 = vtanh.f32 %v1026_v43  ;;  %v1027_v46 = vmul.f32 0.5, %v1019_v44 }
 0x17c   :  { %1274 = vtanh.f32 %v1027_v46 }
 0x17f   :  { %v720_v47 = vpop.f32.mrf.mxu1 }
 0x180   :  { %v721_v3 = vadd.f32 %v720_v47, %v1891_v59 }
 0x181   :  { %v722_v48 = vpop.f32.mrf.mxu1 }
 0x182   :  { %v723_v5 = vadd.f32 %v722_v48, %v1891_v59  ;;  %v763_v24 = vmax.f32 %v721_v3, 0.0 }
 0x183   :  { %v724_v49 = vpop.f32.mrf.mxu1 }
 0x184   :  { %v725_v63 = vadd.f32 %v724_v49, %v1895_v60  ;;  %v764_v15 = vmax.f32 %v723_v5, 0.0  ;;  %v847_v36 = vmul.f32 %v1902_v2, %v763_v24 }
 0x185   :  { %v726_v51 = vpop.f32.mrf.mxu1 }
 0x186   :  { %v727_v56 = vadd.f32 %v726_v51, %v1895_v60  ;;  %v771_v16 = vmax.f32 %v725_v63, 0.0  ;;  %v848_v30 = vmul.f32 %v1902_v2, %v764_v15 }
 0x187   :  { %v1273_v53 = vpop.eup %1272  ;;  %v730_v54 = vpop.f32.mrf.mxu1 }
 0x188   :  { %v1042_v7 = vadd.f32 1.0, %v1273_v53  ;;  %v731_v4 = vadd.f32 %v730_v54, %v1889_v58  ;;  %v772_v12 = vmax.f32 %v727_v56, 0.0  ;;  %v855_v32 = vmul.f32 %v1897_v61, %v771_v16 }
 0x189   :  { %v1275_v57 = vpop.eup %1274  ;;  %v732_v20 = vpop.f32.mrf.mxu1  ;;  %v990_v44 = vsel %vm989_vm2, %v848_v30, 0.0 }
 0x18a   :  { %v733_v31 = vadd.f32 %v732_v20, %v1889_v58  ;;  %v1043_v8 = vadd.f32 1.0, %v1275_v57  ;;  %v2032_v10 = vmul.f32 0.5, %v1042_v7  ;;  %v779_v25 = vmax.f32 %v731_v4, 0.0 }
 0x18b   :  { %v734_v6 = vpop.f32.mrf.mxu1  ;;  %v856_v26 = vmul.f32 %v1897_v61, %v772_v12  ;;  %v976_v46 = vadd.f32 %v855_v32, %v847_v36 }
 0x18c   :  { %v735_v17 = vadd.f32 %v734_v6, %v1893_v55  ;;  %v2035_v22 = vmul.f32 0.5, %v1043_v8  ;;  %v780_v60 = vmax.f32 %v733_v31, 0.0  ;;  %v863_v37 = vmul.f32 %v1911_v21, %v779_v25 }
 0x18d   :  { %v736_v18 = vpop.f32.mrf.mxu1  ;;  %v991_v40 = vsel %vm989_vm2, %v856_v26, 0.0 }
 0x18e   :  { %v737_v23 = vadd.f32 %v736_v18, %v1893_v55  ;;  %v1064_v58 = vcombine.low %v2032_v10, %v2035_v22  ;;  %v787_v33 = vmax.f32 %v735_v17, 0.0  ;;  %v864_v55 = vmul.f32 %v1911_v21, %v780_v60 }
 0x18f   :  { %v740_v59 = vpop.f32.mrf.mxu1  ;;  %v992_v51 = vadd.f32 %v991_v40, %v990_v44  ;;  %v977_v53 = vadd.f32 %v976_v46, %v863_v37 }
 0x190   :  { %v788_v28 = vmax.f32 %v737_v23, 0.0  ;;  %v741_v29 = vadd.f32 %v740_v59, %v1906_v11  ;;  %v871_v47 = vmul.f32 %v1929_v52, %v787_v33 }
 0x191   :  { %v742_v34 = vpop.f32.mrf.mxu1 }
 0x192   :  { %v743_v35 = vadd.f32 %v742_v34, %v1906_v11  ;;  %v795_v38 = vmax.f32 %v741_v29, 0.0  ;;  %v872_v42 = vmul.f32 %v1929_v52, %v788_v28  ;;  %v993_v11 = vsel %vm989_vm2, %v864_v55, 0.0 }
 0x193   :  { %v744_v39 = vpop.f32.mrf.mxu1  ;;  %v994_v20 = vadd.f32 %v993_v11, %v992_v51  ;;  %v978_v52 = vadd.f32 %v977_v53, %v871_v47 }
 0x194   :  { %v796_v43 = vmax.f32 %v743_v35, 0.0  ;;  %v745_v61 = vadd.f32 %v744_v39, %v1923_v41  ;;  %v879_v54 = vmul.f32 %v1945_v19, %v795_v38  ;;  %v995_v57 = vsel %vm989_vm2, %v872_v42, 0.0 }
 0x195   :  { %v746_v48 = vpop.f32.mrf.mxu1  ;;  %v996_v8 = vadd.f32 %v995_v57, %v994_v20 }
 0x196   :  { %v880_v2 = vmul.f32 %v1945_v19, %v796_v43  ;;  %v803_v21 = vmax.f32 %v745_v61, 0.0  ;;  %v747_v49 = vadd.f32 %v746_v48, %v1923_v41  ;;  %v979_v19 = vadd.f32 %v978_v52, %v879_v54 }
 0x197   :  { %v750_v56 = vpop.f32.mrf.mxu1 }
 0x198   :  { %v804_v5 = vmax.f32 %v747_v49, 0.0  ;;  %v751_v63 = vadd.f32 %v750_v56, %v1939_v14  ;;  %v887_v7 = vmul.f32 %v1955_v50, %v803_v21  ;;  %v997_v3 = vsel %vm989_vm2, %v880_v2, 0.0 }
 0x199   :  { %v752_v31 = vpop.f32.mrf.mxu1  ;;  %v998_v18 = vadd.f32 %v997_v3, %v996_v8  ;;  %v1086_v21 = vrot.slane %v1064_v58, %v1985_v45 }
 0x19a   :  { %v888_v4 = vmul.f32 %v1955_v50, %v804_v5  ;;  %v811_v41 = vmax.f32 %v751_v63, 0.0  ;;  %v753_v6 = vadd.f32 %v752_v31, %v1939_v14  ;;  %v980_v60 = vadd.f32 %v979_v19, %v887_v7 }
 0x19b   :  { %v754_v12 = vpop.f32.mrf.mxu1 }
 0x19c   :  { %v999_v15 = vsel %vm989_vm2, %v888_v4, 0.0  ;;  %v895_v16 = vmul.f32 %v1965_v13, %v811_v41  ;;  %v812_v17 = vmax.f32 %v753_v6, 0.0 }
 0x19d   :  { %v755_v23 = vpop.f32.mrf.mxu1  ;;  %v1000_v50 = vadd.f32 %v999_v15, %v998_v18 }
 0x19e   :  { %v981_v24 = vsel %vm902_vm1, %v895_v16, 0.0  ;;  %v896_v25 = vmul.f32 %v1965_v13, %v812_v17 }
 0x19f   :  { %v982_v59 = vadd.f32 %v981_v24, %v980_v60 }
 0x1a0   :  { %v1002_v26 = vsel %vm1001_vm3, %v896_v25, 0.0 }
 0x1a1   :  { %v983_v14 = vrot.slane %v982_v59, 4  ;;  %v1003_v28 = vadd.f32 %v1002_v26, %v1000_v50 }
 0x1a3   :  { %v984_v29 = vadd.f32 %v983_v14, %v982_v59  ;;  %v1004_v30 = vrot.slane %v1003_v28, 4 }
 0x1a5   :  { %v985_v32 = vrot.slane %v984_v29, 2  ;;  %v1005_v33 = vadd.f32 %v1004_v30, %v1003_v28 }
 0x1a7   :  { %v986_v34 = vadd.f32 %v985_v32, %v984_v29  ;;  %v1006_v55 = vrot.slane %v1005_v33, 2 }
 0x1a9   :  { %v987_v35 = vrot.slane %v986_v34, 1  ;;  %v1007_v36 = vadd.f32 %v1006_v55, %v1005_v33 }
 0x1ab   :  { %v988_v37 = vadd.f32 %v987_v35, %v986_v34  ;;  %v1008_v38 = vrot.slane %v1007_v36, 1 }
 0x1ad   :  { %v1020_v39 = vadd.f32 %v1977_v1, %v988_v37  ;;  %v1009_v40 = vadd.f32 %v1008_v38, %v1007_v36 }
 0x1af   :  { %v1028_v42 = vmul.f32 0.5, %v1020_v39  ;;  %v1021_v13 = vadd.f32 %v1977_v1, %v1009_v40  ;;  %v1102_v1 = vrot.slane %v1094_v9, %v1985_v45 }
 0x1b1   :  { %1276 = vtanh.f32 %v1028_v42  ;;  %v1029_v43 = vmul.f32 0.5, %v1021_v13 }
 0x1b3   :  { %1278 = vtanh.f32 %v1029_v43 }
 0x1be   :  { %v1277_v61 = vpop.eup %1276 }
 0x1bf   :  { %v1044_v44 = vadd.f32 1.0, %v1277_v61 }
 0x1c0   :  { %v1279_v46 = vpop.eup %1278 }
 0x1c1   :  { %v1045_v47 = vadd.f32 1.0, %v1279_v46  ;;  %v1052_v48 = vmul.f32 0.5, %v1044_v44 }
 0x1c3   :  { %v1053_v11 = vmul.f32 0.5, %v1045_v47 }
 0x1c5   :  { %v1065_v2 = vcombine.low %v1052_v48, %v1053_v11 }
 0x1c7   :  { %v1093_v49 = vrot.slane %v1065_v2, %v1985_v45 }
 0x1c9   :  { %v1095_v51 = vcombine.low %v1086_v21, %v1093_v49 }
 0x1cb   :  { %v1109_v53 = vrot.slane %v1095_v51, %v1985_v45 }
 0x1cd   :  { %v1110_v54 = vcombine.low %v1102_v1, %v1109_v53 }
 0x1cf   :  { %1116 = vst.msk [vmem:[#allocation2] sm:$0xff] %vm1114_vm4, %v1110_v54 }
 0x1d0   :  { %1291 = shalt.err (!%p1288_p4)
}
 0x1d1   :  { %1126 = dma.vmem_to_hbm [thread:$0]  %s1124_s6, 128, %s2086_s3, [#allocation3]  }
 0x1d2   :  { %1300 = dma.done.wait [#allocation3], 128  }
 0x1d3   :  { %1301 = vsyncadd [#allocation3], 4294967168 }
 0x1d4   :  { %1130 = vsyncpa [#allocation3], 1 }

</bundles_post_ra>
